<compile_context>
chip_gen: v5e
topology: v5e:2x2
jax: 0.10.0
libtpu: 0.0.40
codegen_flags: <defaults>
</compile_context>

<pallas_src>
import functools

import jax
import jax.numpy as jnp
from jax.experimental import pallas as pl
from jax.experimental.pallas import tpu as pltpu


def _round_up(x, m):
    return ((x + m - 1) // m) * m


def patch_embed_kernel(x_ref, w_ref, b_ref, o_ref):
    # MXU matmul with f32 accumulation; bias add on the f32 accumulator (VPU,
    # rides in slack under the MXU); store in bf16 (lane-dense, halves writes).
    acc = jnp.dot(x_ref[...], w_ref[...], preferred_element_type=jnp.float32)
    o_ref[...] = (acc + b_ref[...]).astype(o_ref.dtype)


def _choose_tiling(M):
    """Pick (M_pad, tm): >=2 tiles when possible (v7x megacore), tm <= 1024."""
    if M <= 16:
        m_pad = _round_up(M, 16)       # bf16 packs 16 rows per sublane group
        return m_pad, m_pad            # single tiny tile
    # Aim for >=4 tiles so each of v7x's two TensorCores gets >=2 grid steps,
    # but never exceed 1024 rows per tile (keeps v7x VMEM footprint small while
    # amortizing the ~0.35us/step overhead on v5e/v6e).
    tm = min(1024, _round_up(pl.cdiv(M, 4), 16))
    m_pad = _round_up(M, tm)
    return m_pad, tm


def patch_embed_matmul(xp, wf, bias2, tm):
    M_pad, K_pad = xp.shape
    _, N_pad = wf.shape
    grid = (M_pad // tm,)

    # Actual per-step VMEM footprint (x tile double-buffered, weight/bias
    # single-buffered, bf16 output tile double-buffered) + headroom.
    footprint = (2 * tm * K_pad * 2          # activation tile, bf16, 2 bufs
                 + 1 * K_pad * N_pad * 2     # weight, bf16, 1 buf
                 + 1 * N_pad * 4             # bias, f32, 1 buf
                 + 2 * tm * N_pad * 2)       # output tile, bf16, 2 bufs
    vmem_limit = min(max(2 * footprint, 16 * 1024 * 1024), 48 * 1024 * 1024)

    cost = pl.CostEstimate(
        flops=2 * M_pad * K_pad * N_pad,
        transcendentals=0,
        bytes_accessed=(M_pad * K_pad * 2 + K_pad * N_pad * 2
                        + N_pad * 4 + M_pad * N_pad * 2),
    )

    return pl.pallas_call(
        patch_embed_kernel,
        out_shape=jax.ShapeDtypeStruct((M_pad, N_pad), jnp.bfloat16),
        grid_spec=pltpu.PrefetchScalarGridSpec(
            num_scalar_prefetch=0,
            grid=grid,
            in_specs=[
                # M-tiled activations (double-buffered by default).
                pl.BlockSpec((tm, K_pad), lambda i: (i, 0)),
                # Weight / bias are grid-invariant -> single buffer is enough.
                pl.BlockSpec((K_pad, N_pad), lambda i: (0, 0),
                             pipeline_mode=pl.Buffered(1)),
                pl.BlockSpec((1, N_pad), lambda i: (0, 0),
                             pipeline_mode=pl.Buffered(1)),
            ],
            out_specs=pl.BlockSpec((tm, N_pad), lambda i: (i, 0)),
        ),
        compiler_params=pltpu.CompilerParams(
            # M tiles are independent -> shard the grid across both TCs on v7x.
            dimension_semantics=("parallel",),
            vmem_limit_bytes=vmem_limit,
            # Best effort: let XLA fuse the pad / cast (and, if it can, the
            # patchify transpose) into the pallas_call input DMA.
            allow_input_fusion=[True, True, True],
        ),
        cost_estimate=cost,
    )(xp, wf, bias2)


@functools.partial(jax.jit, static_argnums=(3, 4))
def patch_embed_forward(x, weight, bias, patch_size, stride):
    """x: (B, C, H, W) NCHW; weight: (E, C, P, P); bias: (E,) -> (B, num_patches, E) bf16."""
    B, C, H, W = x.shape
    E = weight.shape[0]
    P = patch_size
    # TODO(synk): overlapping patches (stride != patch_size) would need an
    # im2col gather; the module default (and this kernel) covers ks == stride.
    assert stride == P, "this kernel assumes kernel_size == stride"
    Gh = (H - P) // stride + 1
    Gw = (W - P) // stride + 1
    M = B * Gh * Gw
    K = C * P * P

    # Cast to bf16 FIRST so any materialized patchify copy is half the bytes.
    x = x.astype(jnp.bfloat16)

    # Patchify: (B, C, Gh, P, Gw, P) -> (M, K) with (c, ph, pw) ordering
    # matching Conv2d's flattened kernel.
    xp = x.reshape(B, C, Gh, P, Gw, P).transpose(0, 2, 4, 1, 3, 5).reshape(M, K)

    # Lane-dense padding: K and N to multiples of 128 (zero rows/cols do not
    # change the matmul result); M to a multiple of the chosen tile size.
    K_pad = _round_up(K, 128)
    N_pad = _round_up(E, 128)
    M_pad, tm = _choose_tiling(M)

    xp = jnp.pad(xp, ((0, M_pad - M), (0, K_pad - K)))
    wf = weight.astype(jnp.bfloat16).reshape(E, K).T                # (K, E)
    wf = jnp.pad(wf, ((0, K_pad - K), (0, N_pad - E)))
    b2 = jnp.pad(bias.astype(jnp.float32), (0, N_pad - E)).reshape(1, N_pad)

    out = patch_embed_matmul(xp, wf, b2, tm)                        # (M_pad, N_pad) bf16
    if M_pad != M or N_pad != E:
        out = out[:M, :E]                                           # only if padded
    return out.reshape(B, Gh * Gw, E)                               # (B, num_patches, E)


if __name__ == "__main__":
    # Small shapes consistent with the module: img_size=16, patch_size=4,
    # stride=4, in_chans=4, embed_dim=32, batch=2 -> num_patches = 16.
    B, C, H, W = 2, 4, 16, 16
    P, STRIDE, E = 4, 4, 32

    key = jax.random.PRNGKey(0)
    kx, kw, kb = jax.random.split(key, 3)
    x = jax.random.normal(kx, (B, C, H, W), dtype=jnp.float32)
    weight = jax.random.normal(kw, (E, C, P, P), dtype=jnp.float32) * 0.02
    bias = jax.random.normal(kb, (E,), dtype=jnp.float32) * 0.02

    out = patch_embed_forward(x, weight, bias, P, STRIDE)
    out = jax.block_until_ready(out)

    # Reference: conv-as-einsum over patches (pure f32).
    Gh = (H - P) // STRIDE + 1
    Gw = (W - P) // STRIDE + 1
    xp_ref = x.reshape(B, C, Gh, P, Gw, P).transpose(0, 2, 4, 1, 3, 5)
    ref = jnp.einsum("bghcij,ecij->bghe", xp_ref, weight) + bias
    ref = ref.reshape(B, Gh * Gw, E)

    assert out.shape == (B, Gh * Gw, E), out.shape
    # bf16 inputs + bf16 output with f32 accumulation -> loosened tolerance.
    assert jnp.allclose(out.astype(jnp.float32), ref, atol=2e-2, rtol=2e-2), \
        "mismatch vs reference"
    print("KERNEL_OK")
</pallas_src>

<mosaic_0001>
module attributes {stable_mosaic.version = 11 : i64} {
  func.func @patch_embed_kernel(%arg0: i32, %arg1: memref<16x128xbf16, #tpu.memory_space<vmem>>, %arg2: memref<128x128xbf16, #tpu.memory_space<vmem>>, %arg3: memref<1x128xf32, #tpu.memory_space<vmem>>, %arg4: memref<16x128xbf16, #tpu.memory_space<vmem>>) attributes {dimension_semantics = [#tpu.dimension_semantics<parallel>], iteration_bounds = array<i64: 2>, scalar_prefetch = 0 : i64, scratch_operands = 0 : i64, tpu.core_type = #tpu.core_type<tc>, window_params = [{transform_indices = @transform_0, window_bounds = array<i64: 16, 128>}, {pipeline_mode = #tpu.pipeline_mode<synchronous>, transform_indices = @transform_1, window_bounds = array<i64: 128, 128>}, {pipeline_mode = #tpu.pipeline_mode<synchronous>, transform_indices = @transform_2, window_bounds = array<i64: 1, 128>}, {transform_indices = @transform_3, window_bounds = array<i64: 16, 128>}]} {
    %c0 = arith.constant 0 : index
    %c0_0 = arith.constant 0 : index
    %0 = vector.load %arg1[%c0, %c0_0] : memref<16x128xbf16, #tpu.memory_space<vmem>>, vector<16x128xbf16>
    %c0_1 = arith.constant 0 : index
    %c0_2 = arith.constant 0 : index
    %1 = vector.load %arg2[%c0_1, %c0_2] : memref<128x128xbf16, #tpu.memory_space<vmem>>, vector<128x128xbf16>
    %cst = arith.constant dense<0.000000e+00> : vector<16x128xf32>
    %2 = tpu.matmul %0, %1, %cst {dimension_numbers = #tpu.dot_dimension_numbers<[1], [0], [0], [1], [0, 0, 1, 1], [], []>} : vector<16x128xbf16>, vector<128x128xbf16>, vector<16x128xf32> -> vector<16x128xf32>
    %c0_3 = arith.constant 0 : index
    %c0_4 = arith.constant 0 : index
    %3 = vector.load %arg3[%c0_3, %c0_4] : memref<1x128xf32, #tpu.memory_space<vmem>>, vector<1x128xf32>
    %4 = vector.broadcast %3 : vector<1x128xf32> to vector<16x128xf32>
    %5 = arith.addf %2, %4 : vector<16x128xf32>
    %6 = arith.truncf %5 : vector<16x128xf32> to vector<16x128xbf16>
    %c0_5 = arith.constant 0 : index
    %c0_6 = arith.constant 0 : index
    %7 = vector.load %arg4[%c0_5, %c0_6] : memref<16x128xbf16, #tpu.memory_space<vmem>>, vector<16x128xbf16>
    tpu.vector_store %arg4[%c0_5, %c0_6], %6 {strides = array<i32>} : memref<16x128xbf16, #tpu.memory_space<vmem>>, vector<16x128xbf16>,
    return
  }
  func.func @transform_0(%arg0: i32) -> (i32, i32) {
    %c0_i32 = arith.constant 0 : i32
    %c0_i32_0 = arith.constant 0 : i32
    return %arg0, %c0_i32 : i32, i32
  }
  func.func @transform_1(%arg0: i32) -> (i32, i32) {
    %c0_i32 = arith.constant 0 : i32
    %c0_i32_0 = arith.constant 0 : i32
    %c0_i32_1 = arith.constant 0 : i32
    return %c0_i32, %c0_i32_0 : i32, i32
  }
  func.func @transform_2(%arg0: i32) -> (i32, i32) {
    %c0_i32 = arith.constant 0 : i32
    %c0_i32_0 = arith.constant 0 : i32
    %c0_i32_1 = arith.constant 0 : i32
    return %c0_i32, %c0_i32_0 : i32, i32
  }
  func.func @transform_3(%arg0: i32) -> (i32, i32) {
    %c0_i32 = arith.constant 0 : i32
    %c0_i32_0 = arith.constant 0 : i32
    return %arg0, %c0_i32 : i32, i32
  }
}

</mosaic_0001>

<bundles_post_ra>
// kernel: patch_embed_forward.2
= control target key start
LH: loop header
LB: loop body
LE: loop exit
PB: predicated region body
PF: predicated region fallthrough
CT: control target
= control target key end

     0   :  { %s994_s0 = inlined_call_operand.vmem [shape: bf16[64,32], index: 0, kind: input, shape index: {}]   ;;  %s995_s1 = inlined_call_operand.<no memory space> [shape: bf16[], index: 1, kind: input, shape index: {}]   ;;  %s996_s2 = inlined_call_operand.vmem [shape: bf16[32,64], index: 2, kind: input, shape index: {}]   ;;  %s997_s3 = inlined_call_operand.vmem [shape: f32[32], index: 3, kind: input, shape index: {}]   ;;  %s998_s4 = inlined_call_operand.<no memory space> [shape: f32[], index: 4, kind: input, shape index: {}]   ;;  %s999_s5 = inlined_call_operand.hbm [shape: bf16[32,128], index: 5, kind: output, shape index: {}]  }
   0x1   :  { %v10_v0 = vstv %s995_s1  ;;  %v20_v1 = vstv %s998_s4 }
   0x2   :  { %v866_v2 = vunpack.i.l.bf16 %v10_v0 }
   0x3   :  { %21 = vsyncpa [#allocation18], 0 }
   0x4   :  { %23 = vsyncpa [#allocation18 + $0x1], 0  ;;  %s868_s22 = smov 0   ;;  %s870_s23 = smov 0  }
   0x5   :  { %s872_s24 = smov 0   ;;  %s874_s25 = smov 0  }
   0x6 LB: > { %s889_s1 = sadd.s32 4294967295, %s826_s25   ;;  %s631_s26 = sadd.s32 4294967294, %s826_s25   ;;  %s826_s25 = sphi %s874_s25, %s1005_s25   ;;  %s822_s24 = sphi %s872_s24, %s1004_s24   ;;  %s818_s23 = sphi %s870_s23, %s1003_s23   ;;  %s814_s22 = sphi %s868_s22, %s1002_s22  }
   0x7   : > { %s893_s27 = sadd.s32 1, %s826_s25   ;;  %s104_s28 = sadd.s32 1, %s822_s24 }
   0x8   : > { %s101_s29 = ssub.s32 %s826_s25, %s893_s27  ;;  %p114_p0 = scmp.ne.s32.totalorder %s822_s24, %s818_s23 }
   0x9   : > { %p102_p1 = scmp.eq.s32.totalorder %s101_s29, 0  ;;  %p115_p2 = scmp.eq.s32.totalorder %s889_s1, 1 }
   0xa   : > { %p120_p3 = scmp.ne.s32.totalorder %s818_s23, %s814_s22  ;;  %p121_p4 = scmp.eq.s32.totalorder %s631_s26, 1 }
   0xb   : > { %s904_s30 = scalar_select %p102_p1, %s822_s24, %s104_s28  }
   0xc   : > { %p906_p5 = por %p115_p2, %p114_p0  ;;  %p910_p6 = por %p121_p4, %p120_p3 }
   0xd   : > { %p634_p7 = scmp.ge.s32.totalorder %s826_s25, 1  ;;  %p154_p8 = scmp.lt.s32.totalorder %s826_s25, 3 }
   0xf   : > { %p155_p9 = pnand %p634_p7, %p154_p8 }
  0x11   : > { %158 = sbr.rel (%p155_p9) target bundleno = 205 (0xcd), region = 32 }
  0x16   : > { %v700_v3 = vpack.c.bf16 %v866_v2, %v866_v2  ;;  %v197_v4 = vlaneseq  ;;  %v644_v5 = vld [vmem:[%s994_s0 + $0x18] sm:$0xff]   ;;  %v642_v6 = vld [vmem:[%s994_s0 + $0x10] sm:$0xff]   ;;  %v640_v7 = vld [vmem:[%s994_s0 + $0x8] sm:$0xff]   ;;  %s636_s14 = sshll.u32 %s889_s1, 1  ;;  %s175_s8 = sand.u32 1, %s818_s23  }
  0x17   : > { %v376_v8 = vunpack.c.l.bf16 %v644_v5  ;;  %v399_v9 = vunpack.c.h.bf16 %v644_v5  ;;  %v330_v10 = vunpack.c.l.bf16 %v642_v6  ;;  %v353_v11 = vunpack.c.h.bf16 %v642_v6  ;;  %v238_v12 = vld [vmem:[%s994_s0] sm:$0xff]   ;;  %p179_p10 = scmp.lt.s32.totalorder %s636_s14, 3  ;;  %s635_s9 = sshll.u32 %s175_s8, 3 }
  0x18   : > { %716 = vst [vmem:[#allocation20 + $0x38] sm:$0xff] %v700_v3   ;;  %v198_v13 = vand.u32 127, %v197_v4  ;;  %v284_v14 = vunpack.c.l.bf16 %v640_v7  ;;  %v307_v15 = vunpack.c.h.bf16 %v640_v7  ;;  %v239_v16 = vunpack.c.l.bf16 %v238_v12  ;;  %v451_v40 = vld [vmem:[%s997_s3] sm:$0x1]  ;;  %s696_s10 = sshll.u32 %s889_s1, 3  ;;  %s784_s21 = scalar_lea.hbm %s999_s5, 16 }
  0x19   : > { %701 = vst [vmem:[#allocation20 + $0x20] sm:$0xff] %v700_v3   ;;  %s1007_s14 = smov (!%p179_p10, %s636_s14), 3  ;;  %v261_v17 = vunpack.c.h.bf16 %v238_v12  ;;  %vm454_vm2 = vcmp.lt.s32.totalorder %v197_v4, 32  ;;  %s565_s13 = scalar_lea.hbm %s999_s5, %s696_s10 }
  0x1a   : > { %706 = vst [vmem:[#allocation20 + $0x28] sm:$0xff] %v700_v3   ;;  %vm244_vm0 = vcmp.lt.s32.totalorder %v198_v13, 32  ;;  %s637_s17 = sshll.u32 %s1007_s14, 2  ;;  %vm200_vm1 = vcmp.lt.s32.totalorder %v198_v13, 64  ;;  %v455_v45 = vsel %vm454_vm2, %v451_v40, %v20_v1  ;;  %s177_s14 = scalar_lea.vmem [#allocation17], %s635_s9 }
  0x1b   : > { %711 = vst [vmem:[#allocation20 + $0x30] sm:$0xff] %v700_v3   ;;  %v382_v18 = vsel %vm244_vm0, %v376_v8, %v866_v2  ;;  %v405_v19 = vsel %vm244_vm0, %v399_v9, %v866_v2  ;;  %v336_v20 = vsel %vm244_vm0, %v330_v10, %v866_v2  ;;  %v359_v21 = vsel %vm244_vm0, %v353_v11, %v866_v2  ;;  %s182_s20 = scalar_lea.vmem %s996_s2, %s637_s17  ;;  %s964_s15 = sshll.u32 %s177_s14, 4  ;;  %s567_s15 = int_to_ptr.vmem [resolvable:$true] %s964_s15 }
  0x1c   : > { %v384_v22 = vpack.c.bf16 0.0, %v382_v18  ;;  %v407_v23 = vpack.c.bf16 0.0, %v405_v19  ;;  %v338_v24 = vpack.c.bf16 0.0, %v336_v20  ;;  %v361_v25 = vpack.c.bf16 0.0, %v359_v21  ;;  %v194_v29 = vld [vmem:[%s182_s20] sm:$0xff]   ;;  %s568_s16 = sshll.u32 %s565_s13, 4  ;;  %s569_s16 = int_to_ptr.hbm [resolvable:$true] %s568_s16 }
  0x1d   : > { %v290_v26 = vsel %vm244_vm0, %v284_v14, %v866_v2  ;;  %v313_v27 = vsel %vm244_vm0, %v307_v15, %v866_v2  ;;  %v245_v28 = vsel %vm244_vm0, %v239_v16, %v866_v2  ;;  %v267_v31 = vsel %vm244_vm0, %v261_v17, %v866_v2  ;;  %458 = vst [vmem:[#allocation21] sm:$0x1] %v455_v45  ;;  %s554_s17 = scalar_lea.sflag [#allocation18], %s175_s8  ;;  %s778_s1 = sshra.s32 %s569_s16, 4  ;;  %s779_s1 = int_to_ptr.hbm [resolvable:$true] %s778_s1 }
  0x1e   : > { %387 = vst [vmem:[#allocation20 + $0x18] sm:$0xf] %v384_v22  ;;  %v292_v30 = vpack.c.bf16 0.0, %v290_v26  ;;  %v315_v33 = vpack.c.bf16 0.0, %v313_v27  ;;  %v195_v34 = vunpack.c.l.bf16 %v194_v29  ;;  %v217_v35 = vunpack.c.h.bf16 %v194_v29  ;;  %s780_s18 = scalar_lea.hbm %s779_s1, 8  ;;  %p785_p0 = scmp.lt.s32.totalorder %s779_s1, %s999_s5 }
  0x1f   : > { %v695_v32 = vld [vmem:[#allocation20 + $0x38] sm:$0xff]  ;;  %410 = vst [vmem:[#allocation20 + $0x1c] sm:$0xf] %v407_v23  ;;  %v246_v36 = vpack.c.bf16 0.0, %v245_v28  ;;  %v269_v37 = vpack.c.bf16 0.0, %v267_v31  ;;  %p781_p11 = scmp.ne.s32.totalorder %s779_s1, %s780_s18  ;;  %p786_p1 = scmp.lt.s32.totalorder %s784_s21, %s780_s18 }
  0x20   : > { %341 = vst [vmem:[#allocation20 + $0x10] sm:$0xf] %v338_v24  ;;  %535 = vmatpush.bf16.msra.mxu0 %v695_v32  ;;  %v201_v38 = vsel %vm200_vm1, %v195_v34, %v866_v2  ;;  %v223_v39 = vsel %vm200_vm1, %v217_v35, %v866_v2  ;;  %v692_v46 = vld [vmem:[#allocation20 + $0x20] sm:$0xff] }
  0x21   : > { %364 = vst [vmem:[#allocation20 + $0x14] sm:$0xf] %v361_v25  ;;  %v202_v42 = vpack.c.bf16 0.0, %v201_v38  ;;  %v225_v43 = vpack.c.bf16 0.0, %v223_v39  ;;  %v693_v44 = vld [vmem:[#allocation20 + $0x28] sm:$0xff]  ;;  %p782_p12 = pnand %p781_p11, %p906_p5  ;;  %p787_p2 = por %p786_p1, %p785_p0 }
  0x22   : > { %v694_v41 = vld [vmem:[#allocation20 + $0x30] sm:$0xff]  ;;  %295 = vst [vmem:[#allocation20 + $0x8] sm:$0xf] %v292_v30 }
  0x23   : > { %318 = vst [vmem:[#allocation20 + $0xc] sm:$0xf] %v315_v33  ;;  %p783_p13 = pneg %p782_p12 }
  0x24   : > { %249 = vst [vmem:[#allocation20] sm:$0xf] %v246_v36  ;;  %536 = vmatpush.bf16.msra.mxu0 %v694_v41  ;;  %v763_v53 = vld [vmem:[#allocation21] ss:$0 sm:$0xff] }
  0x25   : > { %272 = vst [vmem:[#allocation20 + $0x4] sm:$0xf] %v269_v37  ;;  %p788_p3 = pnand %p787_p2, %p783_p13 }
  0x26   : > { %205 = vst [vmem:[#allocation19] sm:$0xf] %v202_v42  ;;  %v691_v47 = vld [vmem:[#allocation20 + $0x18] sm:$0xff] }
  0x27   : > { %228 = vst [vmem:[#allocation19 + $0x4] sm:$0xf] %v225_v43 }
  0x28   : > { %537 = vmatpush.bf16.msra.mxu0 %v693_v44  ;;  %v690_v48 = vld [vmem:[#allocation20 + $0x10] sm:$0xff] }
  0x2a   : > { %v689_v49 = vld [vmem:[#allocation20 + $0x8] sm:$0xff] }
  0x2c   : > { %538 = vmatpush.bf16.msra.mxu0 %v692_v46  ;;  %v688_v50 = vld [vmem:[#allocation20] sm:$0xff] }
  0x2e   : > { %v687_v51 = vld [vmem:[#allocation19] sm:$0xff] }
  0x30   : > { %539 = vmatpush.bf16.msra.mxu0 %v691_v47 }
  0x34   : > { %540 = vmatpush.bf16.msra.mxu0 %v690_v48 }
  0x38   : > { %541 = vmatpush.bf16.msra.mxu0 %v689_v49 }
  0x3c   : > { %542 = vmatpush.bf16.msra.mxu0 %v688_v50 }
  0x3f   : > { %543 = vmatmul.bf16.vlgmr.msra.gmra.mxu0 %v687_v51 }
  0xbc   : > { %v544_v52 = vpop.f32.mrf.mxu0 }
  0xbd   : > { %v545_v55 = vadd.f32 %v763_v53, %v544_v52 }
  0xc4   : > { %v546_v54 = vpop.f32.mrf.mxu0 }
  0xc5   : > { %v547_v56 = vadd.f32 %v763_v53, %v546_v54 }
  0xc7   : > { %v720_v57 = vpack.c.bf16 %v547_v56, %v545_v55 }
  0xc9   : > { %721 = vst [vmem:[%s177_s14] sm:$0xff] %v720_v57  }
  0xca   : > { %791 = shalt.err (!%p788_p3)
}
  0xcb   : > { %s828_s29 = smov 64   ;;  %s829_s8 = smov 4  }
  0xcc   : > { %722 = dma.vmem_to_hbm [thread:$0]  (%p906_p5), %s567_s15, 128, %s569_s16, %s554_s17, %s828_s29, %s828_s29, %s829_s8  }
  0xcd PF: > { %p728_p4 = scmp.ge.s32.totalorder %s826_s25, 2  ;;  %s583_s9 = sand.u32 1, %s814_s22  }
  0xce   : > { %s584_s10 = scalar_lea.sflag [#allocation18], %s583_s9 }
  0xcf   : > { %p725_p7 = pnand %p728_p4, %p910_p6 }
  0xd1   : > { %p726_p8 = pneg %p725_p7 }
  0xd3   : > { %809 = dma.done.wait (%p726_p8), %s584_s10, 128  }
  0xd4   : > { %811 = vsyncadd (%p726_p8), %s584_s10, 4294967168  ;;  %p26_p9 = scmp.ge.s32.totalorder %s893_s27, 4   ;;  %s1002_s22 = smov %s818_s23 }
  0xd5   : > { %s1003_s23 = smov %s822_s24  ;;  %s1004_s24 = smov %s904_s30 }
  0xd6   : > { %s1005_s25 = smov %s893_s27  ;;  %28 = sbr.rel (!%p26_p9) target bundleno = 6 (0x6), region = 91 }
  0xdb   :  { %590 = vsyncpa [#allocation18], 1 }
  0xdc   :  { %592 = vsyncpa [#allocation18 + $0x1], 1 }

</bundles_post_ra>
